<compile_context>
chip_gen: v6e
topology: v6e:2x2x1
jax: 0.10.0
libtpu: 0.0.40
codegen_flags: <defaults>
</compile_context>

<pallas_src>
import functools

import numpy as np
import jax
import jax.numpy as jnp
from jax.experimental import pallas as pl
from jax.experimental.pallas import tpu as pltpu


def _gelu(x):
    # TODO(synk): PyTorch nn.GELU() defaults to the exact erf form; tanh approximation is
    # used for robust Mosaic (EUP) lowering. The JAX reference below uses the same form.
    return jax.nn.gelu(x, approximate=True)


def _conv1x1(x, w, b):
    """x: (C_in, HW) f32, w: (C_out, C_in) f32, b: (C_out, 1) f32 -> (C_out, HW) f32.

    Routed to the MXU: the vector-extended VLIW slot is otherwise idle in this kernel, so
    even a tiny matmul co-issues essentially for free and keeps the VALU slot (saturated
    by the depthwise taps) clear."""
    c_out, c_in = w.shape
    if c_in >= 64:
        # Large contraction: bf16 operands for native MXU rate, f32 accumulation.
        return jnp.dot(w.astype(jnp.bfloat16), x.astype(jnp.bfloat16),
                       preferred_element_type=jnp.float32) + b
    return jnp.dot(w, x, preferred_element_type=jnp.float32) + b


def _ffn_kernel(x_ref, p_ref, o_ref, *, H, W, ng):
    # x_ref/o_ref: (ng, CF, HW) block; CF on sublanes, pixels on lanes.
    # p_ref: (CF, 2*CF + 12) packed [w1 | w2 | wdw(9) | b1 | bdw | b2].
    CF = x_ref.shape[1]
    HW = x_ref.shape[2]

    # ---- unpack packed parameter slab (single DMA for all weights/biases) ----
    w1 = p_ref[:, 0:CF]
    w2 = p_ref[:, CF:2 * CF]
    wdw = p_ref[:, 2 * CF:2 * CF + 9]
    b1 = p_ref[:, 2 * CF + 9:2 * CF + 10]
    bdw = p_ref[:, 2 * CF + 10:2 * CF + 11]
    b2 = p_ref[:, 2 * CF + 11:2 * CF + 12]

    # ---- depthwise boundary masks: built once from a lane iota, hoisted out of the
    #      tap loop and out of the per-image loop. No extra HBM input needed. ----
    lane = jax.lax.broadcasted_iota(jnp.int32, (1, HW), 1)
    if (W & (W - 1)) == 0:
        col = lane & (W - 1)
    else:
        # f32 trick avoids vector integer div; exact for HW < 2**24.
        row_f = jnp.floor((lane.astype(jnp.float32) + 0.5) * (1.0 / W))
        col = lane - row_f.astype(jnp.int32) * W
    f32 = jnp.float32
    top_ok = (lane >= W).astype(f32)            # source row h-1 exists
    bot_ok = (lane < (H - 1) * W).astype(f32)   # source row h+1 exists
    left_ok = (col >= 1).astype(f32)            # source col w-1 exists
    right_ok = (col <= W - 2).astype(f32)       # source col w+1 exists
    mask_h = {-1: top_ok, 0: None, 1: bot_ok}
    mask_w = {-1: left_ok, 0: None, 1: right_ok}
    tap_mask = {}
    for dh in (-1, 0, 1):
        for dw in (-1, 0, 1):
            mh, mw = mask_h[dh], mask_w[dw]
            tap_mask[(dh, dw)] = (mh if mw is None else
                                  mw if mh is None else mh * mw)

    bdw_full = jnp.broadcast_to(bdw, (CF, HW)).astype(jnp.float32)  # hoisted (no CSE in loop)

    for n in range(ng):                              # fold-groups in this grid step
        x = x_ref[n].astype(jnp.float32)             # (CF, HW)

        # ---- conv1: 1x1 channel mix + GELU -----------------------------------
        y = _gelu(_conv1x1(x, w1, b1))

        # ---- depthwise 3x3, stride 1, pad 1, via XLU rolls of the flat slab ---
        acc = bdw_full
        for dh in (-1, 0, 1):
            for dw in (-1, 0, 1):
                k = (dh + 1) * 3 + (dw + 1)          # (kh, kw) row-major tap index
                tap = wdw[:, k:k + 1]                # (CF, 1)
                shift = (-(dh * W + dw)) % HW
                shifted = y if shift == 0 else pltpu.roll(y, shift, 1)
                m = tap_mask[(dh, dw)]
                contrib = shifted * tap if m is None else (shifted * m) * tap
                acc = acc + contrib
        y2 = _gelu(acc)

        # ---- conv2: 1x1 -------------------------------------------------------
        z = _conv1x1(y2, w2, b2)
        o_ref[n] = z.astype(o_ref.dtype)


def _pick_fold(N, C):
    """Fold factor: how many images to stack on the sublane axis (free reshape)."""
    fold = 1
    while N % (fold * 2) == 0 and C * fold * 2 <= 8:
        fold *= 2
    return fold


def _pick_groups_per_step(NF, bytes_per_group):
    """Largest divisor of NF with <= ~512 KiB payload per step, while keeping >= 2 grid
    steps (when the batch allows) so v7x's two TensorCores both get work."""
    target = 512 * 1024
    best = 1
    for g in range(1, NF + 1):
        if NF % g:
            continue
        if NF >= 2 and NF // g < 2:
            continue
        if g * bytes_per_group <= target:
            best = max(best, g)
    return best


@jax.jit
def feed_forward(x_nchw, w1, b1, wdw, bdw, w2, b2):
    """PyTorch-layout FeedForward.
       x_nchw: (N, C, H, W)
       w1, w2: (C, C)  == conv{1,2}.weight[:, :, 0, 0]
       wdw:    (C, 9)  == depthConv.weight[:, 0].reshape(C, 9), (kh, kw) row-major
       b1, bdw, b2: (C, 1)"""
    N, C, H, W = x_nchw.shape
    HW = H * W
    in_dtype = x_nchw.dtype

    # Fold images onto sublanes (free row-major reshape) for full 8-sublane occupancy.
    fold = _pick_fold(N, C)
    NF, CF = N // fold, C * fold
    x = x_nchw.reshape(NF, CF, HW)                   # no transpose, no dtype pass

    # Pack all parameters into one small f32 slab -> one DMA descriptor.
    eye = jnp.eye(fold, dtype=jnp.float32)
    w1_bd = jnp.kron(eye, w1.astype(jnp.float32))    # block-diagonal per folded image
    w2_bd = jnp.kron(eye, w2.astype(jnp.float32))
    wdw_t = jnp.tile(wdw.astype(jnp.float32), (fold, 1))
    b1_t = jnp.tile(b1.astype(jnp.float32), (fold, 1))
    bdw_t = jnp.tile(bdw.astype(jnp.float32), (fold, 1))
    b2_t = jnp.tile(b2.astype(jnp.float32), (fold, 1))
    params = jnp.concatenate([w1_bd, w2_bd, wdw_t, b1_t, bdw_t, b2_t], axis=1)
    P = 2 * CF + 12

    ng = _pick_groups_per_step(NF, CF * HW * x.dtype.itemsize)
    grid = (NF // ng,)

    # VMEM budget from actual block sizes (double-buffered in/out + params + f32
    # intermediates), with headroom; capped below v7x's 64 MiB physical VMEM.
    block_bytes = ng * CF * HW * x.dtype.itemsize
    need = 4 * block_bytes + 2 * CF * P * 4 + 8 * CF * HW * 4
    vmem_limit = int(min(max(4 * need, 16 * 1024 * 1024), 48 * 1024 * 1024))

    kernel = functools.partial(_ffn_kernel, H=H, W=W, ng=ng)
    out = pl.pallas_call(
        kernel,
        out_shape=jax.ShapeDtypeStruct((NF, CF, HW), in_dtype),
        grid=grid,
        in_specs=[
            pl.BlockSpec((ng, CF, HW), lambda i: (i, 0, 0)),
            pl.BlockSpec((CF, P), lambda i: (0, 0)),
        ],
        out_specs=pl.BlockSpec((ng, CF, HW), lambda i: (i, 0, 0)),
        compiler_params=pltpu.CompilerParams(
            dimension_semantics=("parallel",),       # v7x: shard grid steps over 2 TCs
            vmem_limit_bytes=vmem_limit),
        # TODO(synk): for very large H*W add a second grid axis tiling HW into row bands
        # (with a W-wide halo for the 3x3 taps), band size chosen per-generation VMEM
        # (64 MiB on v7x vs 128 MiB on v5e/v6e).
    )(x, params)
    return out.reshape(N, C, H, W)


def reference(x_nchw, w1, b1, wdw, bdw, w2, b2):
    """Pure-JAX reference with identical semantics (NCHW in/out)."""
    x = x_nchw.astype(jnp.float32)
    N, C, H, W = x.shape
    y = jnp.einsum('oc,nchw->nohw', w1, x, precision='highest') + b1.reshape(1, C, 1, 1)
    y = _gelu(y)
    yp = jnp.pad(y, ((0, 0), (0, 0), (1, 1), (1, 1)))
    acc = jnp.zeros_like(y)
    for kh in range(3):
        for kw in range(3):
            acc = acc + yp[:, :, kh:kh + H, kw:kw + W] * wdw[:, kh * 3 + kw].reshape(1, C, 1, 1)
    acc = acc + bdw.reshape(1, C, 1, 1)
    y2 = _gelu(acc)
    z = jnp.einsum('oc,nchw->nohw', w2, y2, precision='highest') + b2.reshape(1, C, 1, 1)
    return z


if __name__ == "__main__":
    # Small shapes consistent with the module: dim=C channels, NCHW input.
    N, C, H, W = 2, 4, 16, 16
    key = jax.random.PRNGKey(0)
    ks = jax.random.split(key, 7)

    x = jax.random.normal(ks[0], (N, C, H, W), jnp.float32)
    w1 = jax.random.normal(ks[1], (C, C), jnp.float32) * 0.3   # conv1 1x1 as (Cout, Cin)
    b1 = jax.random.normal(ks[2], (C, 1), jnp.float32) * 0.1
    wdw = jax.random.normal(ks[3], (C, 9), jnp.float32) * 0.3  # depthwise 3x3 taps per channel
    bdw = jax.random.normal(ks[4], (C, 1), jnp.float32) * 0.1
    w2 = jax.random.normal(ks[5], (C, C), jnp.float32) * 0.3   # conv2 1x1 as (Cout, Cin)
    b2 = jax.random.normal(ks[6], (C, 1), jnp.float32) * 0.1

    out = jax.block_until_ready(feed_forward(x, w1, b1, wdw, bdw, w2, b2))

    ref = reference(x, w1, b1, wdw, bdw, w2, b2)
    np.testing.assert_allclose(np.asarray(out), np.asarray(ref), rtol=1e-3, atol=1e-3)
    assert out.shape == (N, C, H, W)
    print("KERNEL_OK")
</pallas_src>

<mosaic_0001>
module attributes {stable_mosaic.version = 11 : i64} {
  func.func @_ffn_kernel(%arg0: i32, %arg1: memref<1x8x256xf32, #tpu.memory_space<vmem>>, %arg2: memref<8x28xf32, #tpu.memory_space<vmem>>, %arg3: memref<1x8x256xf32, #tpu.memory_space<vmem>>) attributes {dimension_semantics = [#tpu.dimension_semantics<parallel>], iteration_bounds = array<i64: 1>, scalar_prefetch = 0 : i64, scratch_operands = 0 : i64, tpu.core_type = #tpu.core_type<tc>, window_params = [{transform_indices = @transform_0, window_bounds = array<i64: 1, 8, 256>}, {pipeline_mode = #tpu.pipeline_mode<synchronous>, transform_indices = @transform_1, window_bounds = array<i64: 8, 28>}, {transform_indices = @transform_2, window_bounds = array<i64: 1, 8, 256>}]} {
    %c0 = arith.constant 0 : index
    %c0_0 = arith.constant 0 : index
    %0 = vector.load %arg2[%c0, %c0_0] : memref<8x28xf32, #tpu.memory_space<vmem>>, vector<8x8xf32>
    %c0_1 = arith.constant 0 : index
    %c8 = arith.constant 8 : index
    %1 = vector.load %arg2[%c0_1, %c8] : memref<8x28xf32, #tpu.memory_space<vmem>>, vector<8x8xf32>
    %c0_2 = arith.constant 0 : index
    %c16 = arith.constant 16 : index
    %2 = vector.load %arg2[%c0_2, %c16] : memref<8x28xf32, #tpu.memory_space<vmem>>, vector<8x9xf32>
    %c0_3 = arith.constant 0 : index
    %c25 = arith.constant 25 : index
    %3 = vector.load %arg2[%c0_3, %c25] : memref<8x28xf32, #tpu.memory_space<vmem>>, vector<8x1xf32>
    %c0_4 = arith.constant 0 : index
    %c26 = arith.constant 26 : index
    %4 = vector.load %arg2[%c0_4, %c26] : memref<8x28xf32, #tpu.memory_space<vmem>>, vector<8x1xf32>
    %c0_5 = arith.constant 0 : index
    %c27 = arith.constant 27 : index
    %5 = vector.load %arg2[%c0_5, %c27] : memref<8x28xf32, #tpu.memory_space<vmem>>, vector<8x1xf32>
    %6 = tpu.iota {dimensions = array<i32: 1>} : vector<1x256xi32>
    %c15_i32 = arith.constant 15 : i32
    %7 = vector.broadcast %c15_i32 : i32 to vector<1x256xi32>
    %8 = arith.andi %6, %7 : vector<1x256xi32>
    %c16_i32 = arith.constant 16 : i32
    %9 = vector.broadcast %c16_i32 : i32 to vector<1x256xi32>
    %10 = arith.cmpi sge, %6, %9 : vector<1x256xi32>
    %11 = arith.extui %10 : vector<1x256xi1> to vector<1x256xi32>
    %12 = arith.sitofp %11 : vector<1x256xi32> to vector<1x256xf32>
    %c240_i32 = arith.constant 240 : i32
    %13 = vector.broadcast %c240_i32 : i32 to vector<1x256xi32>
    %14 = arith.cmpi slt, %6, %13 : vector<1x256xi32>
    %15 = arith.extui %14 : vector<1x256xi1> to vector<1x256xi32>
    %16 = arith.sitofp %15 : vector<1x256xi32> to vector<1x256xf32>
    %c1_i32 = arith.constant 1 : i32
    %17 = vector.broadcast %c1_i32 : i32 to vector<1x256xi32>
    %18 = arith.cmpi sge, %8, %17 : vector<1x256xi32>
    %19 = arith.extui %18 : vector<1x256xi1> to vector<1x256xi32>
    %20 = arith.sitofp %19 : vector<1x256xi32> to vector<1x256xf32>
    %c14_i32 = arith.constant 14 : i32
    %21 = vector.broadcast %c14_i32 : i32 to vector<1x256xi32>
    %22 = arith.cmpi sle, %8, %21 : vector<1x256xi32>
    %23 = arith.extui %22 : vector<1x256xi1> to vector<1x256xi32>
    %24 = arith.sitofp %23 : vector<1x256xi32> to vector<1x256xf32>
    %25 = arith.mulf %12, %20 : vector<1x256xf32>
    %26 = arith.mulf %12, %24 : vector<1x256xf32>
    %27 = arith.mulf %16, %20 : vector<1x256xf32>
    %28 = arith.mulf %16, %24 : vector<1x256xf32>
    %29 = vector.shape_cast %4 : vector<8x1xf32> to vector<8x1xf32>
    %30 = vector.broadcast %29 : vector<8x1xf32> to vector<8x256xf32>
    %c0_6 = arith.constant 0 : index
    %c0_7 = arith.constant 0 : index
    %c0_8 = arith.constant 0 : index
    %31 = vector.load %arg1[%c0_6, %c0_7, %c0_8] : memref<1x8x256xf32, #tpu.memory_space<vmem>>, vector<1x8x256xf32>
    %32 = vector.shape_cast %31 : vector<1x8x256xf32> to vector<8x256xf32>
    %cst = arith.constant dense<0.000000e+00> : vector<8x256xf32>
    %33 = tpu.matmul %0, %32, %cst {dimension_numbers = #tpu.dot_dimension_numbers<[1], [0], [0], [1], [0, 0, 1, 1], [], []>} : vector<8x8xf32>, vector<8x256xf32>, vector<8x256xf32> -> vector<8x256xf32>
    %34 = vector.broadcast %3 : vector<8x1xf32> to vector<8x256xf32>
    %35 = arith.addf %33, %34 : vector<8x256xf32>
    %36 = arith.mulf %35, %35 : vector<8x256xf32>
    %37 = arith.mulf %35, %36 : vector<8x256xf32>
    %cst_9 = arith.constant 4.471500e-02 : f32
    %38 = vector.broadcast %cst_9 : f32 to vector<8x256xf32>
    %39 = arith.mulf %38, %37 : vector<8x256xf32>
    %40 = arith.addf %35, %39 : vector<8x256xf32>
    %cst_10 = arith.constant 0.797884583 : f32
    %41 = vector.broadcast %cst_10 : f32 to vector<8x256xf32>
    %42 = arith.mulf %41, %40 : vector<8x256xf32>
    %43 = math.tanh %42 : vector<8x256xf32>
    %cst_11 = arith.constant 1.000000e+00 : f32
    %44 = vector.broadcast %cst_11 : f32 to vector<8x256xf32>
    %45 = arith.addf %44, %43 : vector<8x256xf32>
    %cst_12 = arith.constant 5.000000e-01 : f32
    %46 = vector.broadcast %cst_12 : f32 to vector<8x256xf32>
    %47 = arith.mulf %46, %45 : vector<8x256xf32>
    %48 = arith.mulf %35, %47 : vector<8x256xf32>
    %49 = vector.extract_strided_slice %2 {offsets = [0, 0], sizes = [8, 1], strides = [1, 1]} : vector<8x9xf32> to vector<8x1xf32>
    %c17_i32 = arith.constant 17 : i32
    %50 = tpu.dynamic_rotate %48 by %c17_i32 dim 1 : vector<8x256xf32>, i32 -> vector<8x256xf32>
    %51 = vector.broadcast %25 : vector<1x256xf32> to vector<8x256xf32>
    %52 = arith.mulf %50, %51 : vector<8x256xf32>
    %53 = vector.broadcast %49 : vector<8x1xf32> to vector<8x256xf32>
    %54 = arith.mulf %52, %53 : vector<8x256xf32>
    %55 = arith.addf %30, %54 : vector<8x256xf32>
    %56 = vector.extract_strided_slice %2 {offsets = [0, 1], sizes = [8, 1], strides = [1, 1]} : vector<8x9xf32> to vector<8x1xf32>
    %c16_i32_13 = arith.constant 16 : i32
    %57 = tpu.dynamic_rotate %48 by %c16_i32_13 dim 1 : vector<8x256xf32>, i32 -> vector<8x256xf32>
    %58 = vector.broadcast %12 : vector<1x256xf32> to vector<8x256xf32>
    %59 = arith.mulf %57, %58 : vector<8x256xf32>
    %60 = vector.broadcast %56 : vector<8x1xf32> to vector<8x256xf32>
    %61 = arith.mulf %59, %60 : vector<8x256xf32>
    %62 = arith.addf %55, %61 : vector<8x256xf32>
    %63 = vector.extract_strided_slice %2 {offsets = [0, 2], sizes = [8, 1], strides = [1, 1]} : vector<8x9xf32> to vector<8x1xf32>
    %c15_i32_14 = arith.constant 15 : i32
    %64 = tpu.dynamic_rotate %48 by %c15_i32_14 dim 1 : vector<8x256xf32>, i32 -> vector<8x256xf32>
    %65 = vector.broadcast %26 : vector<1x256xf32> to vector<8x256xf32>
    %66 = arith.mulf %64, %65 : vector<8x256xf32>
    %67 = vector.broadcast %63 : vector<8x1xf32> to vector<8x256xf32>
    %68 = arith.mulf %66, %67 : vector<8x256xf32>
    %69 = arith.addf %62, %68 : vector<8x256xf32>
    %70 = vector.extract_strided_slice %2 {offsets = [0, 3], sizes = [8, 1], strides = [1, 1]} : vector<8x9xf32> to vector<8x1xf32>
    %c1_i32_15 = arith.constant 1 : i32
    %71 = tpu.dynamic_rotate %48 by %c1_i32_15 dim 1 : vector<8x256xf32>, i32 -> vector<8x256xf32>
    %72 = vector.broadcast %20 : vector<1x256xf32> to vector<8x256xf32>
    %73 = arith.mulf %71, %72 : vector<8x256xf32>
    %74 = vector.broadcast %70 : vector<8x1xf32> to vector<8x256xf32>
    %75 = arith.mulf %73, %74 : vector<8x256xf32>
    %76 = arith.addf %69, %75 : vector<8x256xf32>
    %77 = vector.extract_strided_slice %2 {offsets = [0, 4], sizes = [8, 1], strides = [1, 1]} : vector<8x9xf32> to vector<8x1xf32>
    %78 = vector.broadcast %77 : vector<8x1xf32> to vector<8x256xf32>
    %79 = arith.mulf %48, %78 : vector<8x256xf32>
    %80 = arith.addf %76, %79 : vector<8x256xf32>
    %81 = vector.extract_strided_slice %2 {offsets = [0, 5], sizes = [8, 1], strides = [1, 1]} : vector<8x9xf32> to vector<8x1xf32>
    %c255_i32 = arith.constant 255 : i32
    %82 = tpu.dynamic_rotate %48 by %c255_i32 dim 1 : vector<8x256xf32>, i32 -> vector<8x256xf32>
    %83 = vector.broadcast %24 : vector<1x256xf32> to vector<8x256xf32>
    %84 = arith.mulf %82, %83 : vector<8x256xf32>
    %85 = vector.broadcast %81 : vector<8x1xf32> to vector<8x256xf32>
    %86 = arith.mulf %84, %85 : vector<8x256xf32>
    %87 = arith.addf %80, %86 : vector<8x256xf32>
    %88 = vector.extract_strided_slice %2 {offsets = [0, 6], sizes = [8, 1], strides = [1, 1]} : vector<8x9xf32> to vector<8x1xf32>
    %c241_i32 = arith.constant 241 : i32
    %89 = tpu.dynamic_rotate %48 by %c241_i32 dim 1 : vector<8x256xf32>, i32 -> vector<8x256xf32>
    %90 = vector.broadcast %27 : vector<1x256xf32> to vector<8x256xf32>
    %91 = arith.mulf %89, %90 : vector<8x256xf32>
    %92 = vector.broadcast %88 : vector<8x1xf32> to vector<8x256xf32>
    %93 = arith.mulf %91, %92 : vector<8x256xf32>
    %94 = arith.addf %87, %93 : vector<8x256xf32>
    %95 = vector.extract_strided_slice %2 {offsets = [0, 7], sizes = [8, 1], strides = [1, 1]} : vector<8x9xf32> to vector<8x1xf32>
    %c240_i32_16 = arith.constant 240 : i32
    %96 = tpu.dynamic_rotate %48 by %c240_i32_16 dim 1 : vector<8x256xf32>, i32 -> vector<8x256xf32>
    %97 = vector.broadcast %16 : vector<1x256xf32> to vector<8x256xf32>
    %98 = arith.mulf %96, %97 : vector<8x256xf32>
    %99 = vector.broadcast %95 : vector<8x1xf32> to vector<8x256xf32>
    %100 = arith.mulf %98, %99 : vector<8x256xf32>
    %101 = arith.addf %94, %100 : vector<8x256xf32>
    %102 = vector.extract_strided_slice %2 {offsets = [0, 8], sizes = [8, 1], strides = [1, 1]} : vector<8x9xf32> to vector<8x1xf32>
    %c239_i32 = arith.constant 239 : i32
    %103 = tpu.dynamic_rotate %48 by %c239_i32 dim 1 : vector<8x256xf32>, i32 -> vector<8x256xf32>
    %104 = vector.broadcast %28 : vector<1x256xf32> to vector<8x256xf32>
    %105 = arith.mulf %103, %104 : vector<8x256xf32>
    %106 = vector.broadcast %102 : vector<8x1xf32> to vector<8x256xf32>
    %107 = arith.mulf %105, %106 : vector<8x256xf32>
    %108 = arith.addf %101, %107 : vector<8x256xf32>
    %109 = arith.mulf %108, %108 : vector<8x256xf32>
    %110 = arith.mulf %108, %109 : vector<8x256xf32>
    %cst_17 = arith.constant 4.471500e-02 : f32
    %111 = vector.broadcast %cst_17 : f32 to vector<8x256xf32>
    %112 = arith.mulf %111, %110 : vector<8x256xf32>
    %113 = arith.addf %108, %112 : vector<8x256xf32>
    %cst_18 = arith.constant 0.797884583 : f32
    %114 = vector.broadcast %cst_18 : f32 to vector<8x256xf32>
    %115 = arith.mulf %114, %113 : vector<8x256xf32>
    %116 = math.tanh %115 : vector<8x256xf32>
    %cst_19 = arith.constant 1.000000e+00 : f32
    %117 = vector.broadcast %cst_19 : f32 to vector<8x256xf32>
    %118 = arith.addf %117, %116 : vector<8x256xf32>
    %cst_20 = arith.constant 5.000000e-01 : f32
    %119 = vector.broadcast %cst_20 : f32 to vector<8x256xf32>
    %120 = arith.mulf %119, %118 : vector<8x256xf32>
    %121 = arith.mulf %108, %120 : vector<8x256xf32>
    %cst_21 = arith.constant dense<0.000000e+00> : vector<8x256xf32>
    %122 = tpu.matmul %1, %121, %cst_21 {dimension_numbers = #tpu.dot_dimension_numbers<[1], [0], [0], [1], [0, 0, 1, 1], [], []>} : vector<8x8xf32>, vector<8x256xf32>, vector<8x256xf32> -> vector<8x256xf32>
    %123 = vector.broadcast %5 : vector<8x1xf32> to vector<8x256xf32>
    %124 = arith.addf %122, %123 : vector<8x256xf32>
    %c0_22 = arith.constant 0 : index
    %c0_23 = arith.constant 0 : index
    %c0_24 = arith.constant 0 : index
    %125 = vector.load %arg3[%c0_22, %c0_23, %c0_24] : memref<1x8x256xf32, #tpu.memory_space<vmem>>, vector<1x8x256xf32>
    %126 = vector.shape_cast %125 : vector<1x8x256xf32> to vector<8x256xf32>
    %127 = vector.shape_cast %124 : vector<8x256xf32> to vector<1x8x256xf32>
    tpu.vector_store %arg3[%c0_22, %c0_23, %c0_24], %127 {strides = array<i32>} : memref<1x8x256xf32, #tpu.memory_space<vmem>>, vector<1x8x256xf32>,
    return
  }
  func.func @transform_0(%arg0: i32) -> (i32, i32, i32) {
    %c0_i32 = arith.constant 0 : i32
    %c0_i32_0 = arith.constant 0 : i32
    %c0_i32_1 = arith.constant 0 : i32
    return %arg0, %c0_i32, %c0_i32_0 : i32, i32, i32
  }
  func.func @transform_1(%arg0: i32) -> (i32, i32) {
    %c0_i32 = arith.constant 0 : i32
    %c0_i32_0 = arith.constant 0 : i32
    %c0_i32_1 = arith.constant 0 : i32
    return %c0_i32, %c0_i32_0 : i32, i32
  }
  func.func @transform_2(%arg0: i32) -> (i32, i32, i32) {
    %c0_i32 = arith.constant 0 : i32
    %c0_i32_0 = arith.constant 0 : i32
    %c0_i32_1 = arith.constant 0 : i32
    return %arg0, %c0_i32, %c0_i32_0 : i32, i32, i32
  }
}

</mosaic_0001>

<bundles_post_ra>
// kernel: feed_forward.1
= control target key start
LH: loop header
LB: loop body
LE: loop exit
PB: predicated region body
PF: predicated region fallthrough
CT: control target
= control target key end

     0   :  { %v450_v2 = vmov 0.0   ;;  %vm60_vm0 = vcmask 64512   ;;  %v451_v4 = vmov 25   ;;  %v452_v5 = vmov 26   ;;  %s463_s15 = smov 113   ;;  %s464_s16 = smov 16   ;;  %s601_s0 = inlined_call_operand.vmem [shape: f32[1,8,256], index: 0, kind: input, shape index: {}]   ;;  %s602_s1 = inlined_call_operand.vmem [shape: f32[8,28], index: 1, kind: input, shape index: {}]   ;;  %s603_s2 = inlined_call_operand.vmem [shape: f32[1,8,256], index: 2, kind: output, shape index: {}]  }
   0x1   :  { %v55_v0 = vld [vmem:[%s601_s0 + $0x8] sm:$0xff]  ;;  %v54_v1 = vld [vmem:[%s601_s0] sm:$0xff]  ;;  %127 = vmatprep.mubr.f32.mxu0 %v450_v2  ;;  %429 = vset.pattern.permute.xlu0 %v451_v4  ;;  %v453_v6 = vmov 16   ;;  %v454_v7 = vmov 17   ;;  %v455_v8 = vmov 20   ;;  %v456_v9 = vmov 18  }
   0x2   :  { %v497_v3 = vld [vmem:[%s602_s1] sm:$0xff]  ;;  %93 = vmatprep.subr.mxu0 %v55_v0  ;;  %431 = vset.pattern.permute.xlu1 %v452_v5  ;;  %v457_v10 = vmov 19   ;;  %v458_v11 = vmov 21   ;;  %v459_v12 = vmov 22   ;;  %v460_v13 = vmov 23   ;;  %s461_s0 = smov 1  }
   0x3   :  { %57 = vperm.xlu0 %429, %v497_v3   ;;  %94 = vmatpush1.msra.mxu0 %v54_v1  ;;  %s462_s1 = smov 17   ;;  %s465_s17 = smov 15   ;;  %v468_v37 = vmov 24   ;;  %v471_v38 = vmov 27   ;;  %v12_v47 = vlaneseq }
   0x4   :  { %405 = vmatmul.mubr.msk.f32.vlgmr.msra.gmra.mxu0 %vm60_vm0, %v497_v3  ;;  %51 = vperm.xlu1 %431, %v497_v3   ;;  %s466_s18 = smov 127   ;;  %s467_s19 = smov 112  }
   0x5   :  { %386 = vmatprep.mubr.f32.mxu1 %v450_v2  ;;  %s469_s20 = smov 111   ;;  %s470_s21 = smov 120   ;;  %v545_v50 = vand.u32 127, %v12_v47 }
   0x7   :  { %430 = vset.pattern.permute.xlu0 %v453_v6  ;;  %v14_v53 = vadd.s32 128, %v545_v50  ;;  %v15_v54 = vand.u32 15, %v545_v50  ;;  %vm17_vm2 = vcmp.ge.s32.totalorder %v545_v50, 16  ;;  %vm173_vm3 = vcmp.lt.s32.totalorder %v545_v50, 16 }
   0x8   :  { %162 = vperm.xlu0 %430, %v497_v3   ;;  %433 = vset.pattern.permute.xlu1 %v456_v9  ;;  %v399_v60 = vsel %vm17_vm2, 1.0, %v450_v2  ;;  %vm156_vm6 = vcmp.lt.s32.totalorder %v545_v50, 17  ;;  %vm190_vm8 = vcmp.lt.s32.totalorder %v545_v50, 15  ;;  %vm207_vm9 = vcmp.lt.s32.totalorder %v545_v50, 1 }
   0x9   :  { %196 = vperm.xlu1 %433, %v497_v3   ;;  %vm29_vm1 = vcmp.ge.s32.totalorder %v15_v54, 1  ;;  %v16_v57 = vand.u32 15, %v14_v53  ;;  %vm35_vm4 = vcmp.le.s32.totalorder %v15_v54, 14  ;;  %vm24_vm10 = vcmp.lt.s32.totalorder %v14_v53, 240 }
   0xa   :  { %v554_v58 = vsel %vm29_vm1, 1.0, %v450_v2  ;;  %v562_v63 = vsel %vm35_vm4, 1.0, %v450_v2  ;;  %vm232_vm11 = vcmp.lt.s32.totalorder %v545_v50, 127  ;;  %vm249_vm12 = vcmp.lt.s32.totalorder %v545_v50, 113 }
   0xb   :  { %vm30_vm5 = vcmp.ge.s32.totalorder %v16_v57, 1  ;;  %v41_v62 = vmul.f32 %v554_v58, %v399_v60  ;;  %vm36_vm7 = vcmp.le.s32.totalorder %v16_v57, 14  ;;  %vm266_vm13 = vcmp.lt.s32.totalorder %v545_v50, 112 }
   0xc   :  { %432 = vset.pattern.permute.xlu0 %v454_v7  ;;  %v402_v0 = vsel %vm30_vm5, 1.0, %v450_v2  ;;  %vm283_vm14 = vcmp.lt.s32.totalorder %v545_v50, 111 }
   0xd   :  { %179 = vperm.xlu0 %432, %v497_v3   ;;  %434 = vset.pattern.permute.xlu1 %v457_v10 }
   0xe   :  { %213 = vperm.xlu1 %434, %v497_v3  }
  0x11   :  { %435 = vset.pattern.permute.xlu0 %v455_v8  ;;  %v43_v8 = vmul.f32 %v562_v63, %v399_v60 }
  0x12   :  { %221 = vperm.xlu0 %435, %v497_v3   ;;  %436 = vset.pattern.permute.xlu1 %v458_v11  ;;  %v404_v11 = vsel %vm36_vm7, 1.0, %v450_v2 }
  0x13   :  { %238 = vperm.xlu1 %436, %v497_v3  }
  0x16   :  { %438 = vset.pattern.permute.xlu0 %v460_v13 }
  0x17   :  { %437 = vset.pattern.permute.xlu1 %v459_v12 }
  0x18   :  { %255 = vperm.xlu1 %437, %v497_v3  }
  0x1c   :  { %440 = vset.pattern.permute.xlu1 %v471_v38 }
  0x7e   :  { %v58_v14 = vpop.permute.xlu0 %57 }
  0x7f   :  { %v52_v39 = vpop.permute.xlu1 %51 }
  0x83   :  { %v163_v42 = vpop.permute.xlu0 %162 }
  0x84   :  { %v535_v40 = vpop.permute.xlu1 %196 }
  0x88   :  { %v180_v44 = vpop.permute.xlu0 %179 }
  0x89   :  { %v537_v41 = vpop.permute.xlu1 %213 }
  0x8d   :  { %v543_v46 = vpop.permute.xlu0 %221 }
  0x8e   :  { %v539_v43 = vpop.permute.xlu1 %238 }
  0x93   :  { %v541_v45 = vpop.permute.xlu1 %255 }
  0xc4   :  { %v129_v15 = vpop.f32.mrf.mxu0 }
  0xc5   :  { %v130_v16 = vadd.f32 %v129_v15, %v58_v14 }
  0xc6   :  { %v131_v17 = vpop.f32.mrf.mxu0 }
  0xc7   :  { %v134_v18 = vmul.f32 %v130_v16, %v130_v16  ;;  %v132_v19 = vadd.f32 %v131_v17, %v58_v14 }
  0xc9   :  { %v136_v20 = vmul.f32 %v134_v18, %v130_v16  ;;  %v135_v21 = vmul.f32 %v132_v19, %v132_v19 }
  0xcb   :  { %v138_v22 = vmul.f32 0.044715, %v136_v20  ;;  %v137_v23 = vmul.f32 %v135_v21, %v132_v19 }
  0xcd   :  { %v140_v24 = vadd.f32 %v138_v22, %v130_v16  ;;  %v139_v25 = vmul.f32 0.044715, %v137_v23 }
  0xcf   :  { %v142_v26 = vmul.f32 0.7978846, %v140_v24  ;;  %v141_v27 = vadd.f32 %v139_v25, %v132_v19 }
  0xd1   :  { %442 = vtanh.f32 %v142_v26  ;;  %v143_v28 = vmul.f32 0.7978846, %v141_v27 }
  0xd3   :  { %444 = vtanh.f32 %v143_v28 }
  0xde   :  { %v443_v29 = vpop.eup %442 }
  0xdf   :  { %v146_v30 = vadd.f32 1.0, %v443_v29  ;;  %v400_v29 = vsel %vm24_vm10, 1.0, %v450_v2 }
  0xe0   :  { %v445_v31 = vpop.eup %444  ;;  %v46_v47 = vmul.f32 %v402_v0, %v400_v29 }
  0xe1   :  { %v148_v32 = vmul.f32 0.5, %v146_v30  ;;  %v147_v34 = vadd.f32 1.0, %v445_v31 }
  0xe3   :  { %v511_v33 = vmul.f32 %v148_v32, %v130_v16  ;;  %v149_v35 = vmul.f32 0.5, %v147_v34 }
  0xe5   :  { %203 = vrot.lane.b32.xlu0 %v511_v33, %s461_s0  ;;  %152 = vrot.lane.b32.xlu1 %v511_v33, %s462_s1  ;;  %v517_v36 = vmul.f32 %v149_v35, %v132_v19 }
  0xe9   :  { %245 = vrot.lane.b32.xlu0 %v511_v33, %s463_s15  ;;  %169 = vrot.lane.b32.xlu1 %v511_v33, %s464_s16 }
  0xed   :  { %171 = vrot.lane.b32.xlu0 %v517_v36, %s464_s16  ;;  %186 = vrot.lane.b32.xlu1 %v511_v33, %s465_s17 }
  0xf1   :  { %188 = vrot.lane.b32.xlu0 %v517_v36, %s465_s17  ;;  %228 = vrot.lane.b32.xlu1 %v511_v33, %s466_s18 }
  0xf5   :  { %272 = vperm.xlu0 %438, %v497_v3   ;;  %154 = vrot.lane.b32.xlu1 %v517_v36, %s462_s1 }
  0xf9   :  { %230 = vrot.lane.b32.xlu0 %v517_v36, %s466_s18  ;;  %262 = vrot.lane.b32.xlu1 %v511_v33, %s467_s19 }
  0xfa   :  { %439 = vset.pattern.permute.xlu0 %v468_v37 }
  0xfd   :  { %205 = vrot.lane.b32.xlu1 %v517_v36, %s461_s0  ;;  %289 = vperm.xlu0 %439, %v497_v3  }
 0x101   :  { %279 = vrot.lane.b32.xlu1 %v511_v33, %s469_s20  ;;  %318 = vrot.lane.b32.xlu0 %v497_v3, %s470_s21 }
 0x102   :  { %441 = vset.pattern.permute.xlu0 %v471_v38 }
 0x105   :  { %247 = vrot.lane.b32.xlu1 %v517_v36, %s463_s15 }
 0x109   :  { %264 = vrot.lane.b32.xlu1 %v517_v36, %s467_s19 }
 0x10d   :  { %281 = vrot.lane.b32.xlu1 %v517_v36, %s469_s20 }
 0x111   :  { %315 = vperm.xlu1 %440, %v497_v3  }
 0x157   :  { %v204_v48 = vpop.permute.xlu0 %203  ;;  %v153_v49 = vpop.permute.xlu1 %152 }
 0x15b   :  { %v547_v51 = vpop.permute.xlu0 %245  ;;  %v170_v52 = vpop.permute.xlu1 %169 }
 0x15f   :  { %v187_v55 = vpop.permute.xlu1 %186  ;;  %v172_v56 = vpop.permute.xlu0 %171 }
 0x160   :  { %v175_v61 = vsel %vm173_vm3, %v172_v56, %v170_v52  ;;  %v174_v7 = vsel %vm173_vm3, %v170_v52, %v172_v56 }
 0x161   :  { %v176_v4 = vmul.f32 %v399_v60, %v175_v61  ;;  %v183_v18 = vmul.f32 %v180_v44, %v174_v7 }
 0x163   :  { %v229_v59 = vpop.permute.xlu1 %228  ;;  %v189_v1 = vpop.permute.xlu0 %188  ;;  %v182_v17 = vmul.f32 %v180_v44, %v176_v4  ;;  %v224_v44 = vmul.f32 %v543_v46, %v511_v33 }
 0x164   :  { %v191_v12 = vsel %vm190_vm8, %v187_v55, %v189_v1  ;;  %v192_v13 = vsel %vm190_vm8, %v189_v1, %v187_v55  ;;  %v225_v55 = vmul.f32 %v543_v46, %v517_v36 }
 0x165   :  { %v193_v19 = vmul.f32 %v192_v13, %v43_v8  ;;  %v194_v20 = vmul.f32 %v404_v11, %v191_v12 }
 0x167   :  { %v155_v3 = vpop.permute.xlu1 %154  ;;  %v199_v30 = vmul.f32 %v535_v40, %v193_v19  ;;  %v200_v31 = vmul.f32 %v535_v40, %v194_v20 }
 0x168   :  { %v157_v5 = vsel %vm156_vm6, %v153_v49, %v155_v3  ;;  %v158_v6 = vsel %vm156_vm6, %v155_v3, %v153_v49 }
 0x169   :  { %v159_v9 = vmul.f32 %v158_v6, %v41_v62  ;;  %v160_v10 = vmul.f32 %v402_v0, %v157_v5  ;;  %v48_v5 = vmul.f32 %v404_v11, %v400_v29 }
 0x16b   :  { %v165_v14 = vmul.f32 %v163_v42, %v159_v9  ;;  %v166_v15 = vmul.f32 %v163_v42, %v160_v10  ;;  %v263_v16 = vpop.permute.xlu1 %262 }
 0x16d   :  { %v167_v21 = vadd.f32 %v165_v14, %v52_v39  ;;  %v168_v22 = vadd.f32 %v166_v15, %v52_v39 }
 0x16f   :  { %v184_v23 = vadd.f32 %v182_v17, %v167_v21  ;;  %v185_v24 = vadd.f32 %v183_v18, %v168_v22  ;;  %v206_v25 = vpop.permute.xlu1 %205 }
 0x170   :  { %v208_v26 = vsel %vm207_vm9, %v204_v48, %v206_v25  ;;  %v209_v27 = vsel %vm207_vm9, %v206_v25, %v204_v48  ;;  %v273_v28 = vpop.permute.xlu0 %272 }
 0x171   :  { %v210_v32 = vmul.f32 %v554_v58, %v209_v27  ;;  %v211_v34 = vmul.f32 %v402_v0, %v208_v26  ;;  %v201_v35 = vadd.f32 %v199_v30, %v184_v23  ;;  %v202_v37 = vadd.f32 %v200_v31, %v185_v24 }
 0x173   :  { %v216_v38 = vmul.f32 %v537_v41, %v210_v32  ;;  %v217_v39 = vmul.f32 %v537_v41, %v211_v34  ;;  %v280_v42 = vpop.permute.xlu1 %279 }
 0x174   :  { %v231_v2 = vpop.permute.xlu0 %230 }
 0x175   :  { %v218_v40 = vadd.f32 %v216_v38, %v201_v35  ;;  %v219_v48 = vadd.f32 %v217_v39, %v202_v37  ;;  %v233_v49 = vsel %vm232_vm11, %v229_v59, %v231_v2  ;;  %v234_v52 = vsel %vm232_vm11, %v231_v2, %v229_v59 }
 0x176   :  { %v235_v53 = vmul.f32 %v562_v63, %v233_v49  ;;  %v236_v54 = vmul.f32 %v404_v11, %v234_v52 }
 0x177   :  { %v226_v56 = vadd.f32 %v224_v44, %v218_v40  ;;  %v248_v41 = vpop.permute.xlu1 %247  ;;  %v227_v61 = vadd.f32 %v225_v55, %v219_v48 }
 0x178   :  { %v241_v57 = vmul.f32 %v539_v43, %v235_v53  ;;  %v250_v33 = vsel %vm249_vm12, %v547_v51, %v248_v41  ;;  %v251_v60 = vsel %vm249_vm12, %v248_v41, %v547_v51  ;;  %v242_v62 = vmul.f32 %v539_v43, %v236_v54  ;;  %v290_v13 = vpop.permute.xlu0 %289 }
 0x179   :  { %v252_v59 = vmul.f32 %v554_v58, %v250_v33  ;;  %v253_v0 = vmul.f32 %v251_v60, %v46_v47 }
 0x17a   :  { %v243_v1 = vadd.f32 %v241_v57, %v226_v56  ;;  %v244_v6 = vadd.f32 %v242_v62, %v227_v61 }
 0x17b   :  { %v258_v3 = vmul.f32 %v541_v45, %v252_v59  ;;  %v265_v36 = vpop.permute.xlu1 %264  ;;  %v259_v7 = vmul.f32 %v541_v45, %v253_v0 }
 0x17c   :  { %v267_v46 = vsel %vm266_vm13, %v263_v16, %v265_v36  ;;  %v268_v4 = vsel %vm266_vm13, %v265_v36, %v263_v16  ;;  %v319_v38 = vpop.permute.xlu0 %318 }
 0x17d   :  { %v270_v8 = vmul.f32 %v400_v29, %v268_v4  ;;  %v260_v51 = vadd.f32 %v258_v3, %v243_v1  ;;  %v275_v9 = vmul.f32 %v273_v28, %v267_v46  ;;  %v261_v14 = vadd.f32 %v259_v7, %v244_v6 }
 0x17f   :  { %v276_v10 = vmul.f32 %v273_v28, %v270_v8  ;;  %v282_v43 = vpop.permute.xlu1 %281  ;;  %v277_v18 = vadd.f32 %v275_v9, %v260_v51 }
 0x180   :  { %v284_v12 = vsel %vm283_vm14, %v280_v42, %v282_v43  ;;  %v285_v58 = vsel %vm283_vm14, %v282_v43, %v280_v42 }
 0x181   :  { %v286_v15 = vmul.f32 %v562_v63, %v284_v12  ;;  %v287_v17 = vmul.f32 %v285_v58, %v48_v5  ;;  %v278_v16 = vadd.f32 %v276_v10, %v261_v14 }
 0x183   :  { %v292_v11 = vmul.f32 %v290_v13, %v286_v15  ;;  %v293_v19 = vmul.f32 %v290_v13, %v287_v17 }
 0x185   :  { %v294_v20 = vadd.f32 %v292_v11, %v277_v18  ;;  %v295_v45 = vadd.f32 %v293_v19, %v278_v16 }
 0x187   :  { %v296_v21 = vmul.f32 %v294_v20, %v294_v20  ;;  %v297_v22 = vmul.f32 %v295_v45, %v295_v45 }
 0x189   :  { %v299_v50 = vmul.f32 %v297_v22, %v295_v45  ;;  %v298_v23 = vmul.f32 %v296_v21, %v294_v20 }
 0x18b   :  { %v301_v24 = vmul.f32 0.044715, %v299_v50  ;;  %v300_v25 = vmul.f32 0.044715, %v298_v23 }
 0x18c   :  { %v316_v42 = vpop.permute.xlu1 %315 }
 0x18d   :  { %v303_v26 = vadd.f32 %v301_v24, %v295_v45  ;;  %v302_v27 = vadd.f32 %v300_v25, %v294_v20 }
 0x18f   :  { %v305_v28 = vmul.f32 0.7978846, %v303_v26  ;;  %v304_v29 = vmul.f32 0.7978846, %v302_v27 }
 0x191   :  { %446 = vtanh.f32 %v305_v28 }
 0x192   :  { %448 = vtanh.f32 %v304_v29 }
 0x19e   :  { %v447_v63 = vpop.eup %446 }
 0x19f   :  { %v449_v30 = vpop.eup %448  ;;  %v309_v31 = vadd.f32 1.0, %v447_v63 }
 0x1a0   :  { %v308_v32 = vadd.f32 1.0, %v449_v30 }
 0x1a1   :  { %v311_v34 = vmul.f32 0.5, %v309_v31 }
 0x1a2   :  { %v310_v35 = vmul.f32 0.5, %v308_v32 }
 0x1a3   :  { %v313_v37 = vmul.f32 %v311_v34, %v295_v45 }
 0x1a4   :  { %v312_v39 = vmul.f32 %v310_v35, %v294_v20 }
 0x1a5   :  { %352 = vmatprep.subr.mxu1 %v313_v37 }
 0x1a6   :  { %353 = vmatpush1.msra.mxu1 %v312_v39 }
 0x1a7   :  { %406 = vmatmul.mubr.msk.f32.vlgmr.msra.gmra.mxu1 %vm60_vm0, %v319_v38 }
 0x267   :  { %v388_v44 = vpop.f32.mrf.mxu1 }
 0x268   :  { %v389_v2 = vadd.f32 %v388_v44, %v316_v42 }
 0x269   :  { %v390_v47 = vpop.f32.mrf.mxu1 }
 0x26a   :  { %393 = vst [vmem:[%s603_s2] sm:$0xff] %v389_v2  ;;  %v391_v40 = vadd.f32 %v390_v47, %v316_v42 }
 0x26c   :  { %394 = vst [vmem:[%s603_s2 + $0x8] sm:$0xff] %v391_v40 }

</bundles_post_ra>
